<compile_context>
chip_gen: v7x
topology: tpu7x:2x2x1
jax: 0.10.0
libtpu: 0.0.40
codegen_flags: <defaults>
</compile_context>

<pallas_src>
import math
import functools

import jax
import jax.numpy as jnp
from jax.experimental import pallas as pl
from jax.experimental.pallas import tpu as pltpu


def _gwl_kernel(x_ref, w_ref, b_ref, o_ref):
    # x_ref: [tb, tc, H]   w_ref: [tc, H]   b_ref: [1, tc]   o_ref: [tb, tc]
    prod = x_ref[...] * w_ref[...][None, :, :]           # VPU elementwise multiply
    o_ref[...] = jnp.sum(prod, axis=-1) + b_ref[...]     # XLU lane reduce; lane-dense store


@functools.partial(jax.jit, static_argnames=("block_c",))
def group_wise_linear(x, w, b, *, block_c=128):
    """out[n, c] = sum_h W[c, h] * x[n, c, h] + b[c]   (GroupWiseLinear forward, bias=True).

    x: [B, C, H]; w: [1, C, H] (PyTorch param layout) or [C, H]; b: [1, C] or [C].
    """
    B, C, H = x.shape
    w2 = w.reshape(C, H).astype(x.dtype)
    b2 = b.reshape(1, C).astype(x.dtype)

    # Lane-dense class axis: pad C -> multiple of 128 so output stores are unmasked.
    Cp = pl.cdiv(C, 128) * 128
    tc = min(block_c, Cp)
    assert Cp % tc == 0
    # Batch tile: whole batch if small, otherwise sublane-aligned tiles of 8.
    tb = B if B <= 8 else 8
    Bp = pl.cdiv(B, tb) * tb

    x_p = jnp.pad(x, ((0, Bp - B), (0, Cp - C), (0, 0)))
    w_p = jnp.pad(w2, ((0, Cp - C), (0, 0)))
    b_p = jnp.pad(b2, ((0, 0), (0, Cp - C)))

    out = pl.pallas_call(
        _gwl_kernel,
        out_shape=jax.ShapeDtypeStruct((Bp, Cp), x.dtype),
        grid=(Bp // tb, Cp // tc),
        in_specs=[
            pl.BlockSpec((tb, tc, H), lambda i, j: (i, j, 0)),
            pl.BlockSpec((tc, H), lambda i, j: (j, 0)),
            pl.BlockSpec((1, tc), lambda i, j: (0, j)),
        ],
        out_specs=pl.BlockSpec((tb, tc), lambda i, j: (i, j)),
        compiler_params=pltpu.CompilerParams(
            dimension_semantics=("parallel", "parallel")),
    )(x_p, w_p, b_p)
    return out[:B, :C]


if __name__ == "__main__":
    key = jax.random.PRNGKey(0)
    kx, kw, kb, kx2, kw2, kb2 = jax.random.split(key, 6)

    # Shapes implied by the module's use in AttChannel: num_class=17, hidden_dim=128, batch=2.
    B, C, H = 2, 17, 128
    stdv = 1.0 / math.sqrt(H)                              # reset_parameters(): uniform(-stdv, stdv)
    W = stdv * (2.0 * jax.random.uniform(kw, (1, C, H), dtype=jnp.float32) - 1.0)
    bias = stdv * (2.0 * jax.random.uniform(kb, (1, C), dtype=jnp.float32) - 1.0)
    x = jax.random.normal(kx, (B, C, H), dtype=jnp.float32)

    out = group_wise_linear(x, W, bias)
    jax.block_until_ready(out)
    ref = (W * x).sum(-1) + bias
    assert out.shape == (B, C)
    assert bool(jnp.allclose(out, ref, atol=1e-4, rtol=1e-4)), "GroupWiseLinear mismatch"

    # Second shape exercises the padded / multi-tile paths (C not a multiple of 128, odd batch).
    B2, C2, H2 = 3, 40, 256
    stdv2 = 1.0 / math.sqrt(H2)
    W2 = stdv2 * (2.0 * jax.random.uniform(kw2, (1, C2, H2), dtype=jnp.float32) - 1.0)
    bias2 = stdv2 * (2.0 * jax.random.uniform(kb2, (1, C2), dtype=jnp.float32) - 1.0)
    x2 = jax.random.normal(kx2, (B2, C2, H2), dtype=jnp.float32)
    out2 = group_wise_linear(x2, W2, bias2)
    jax.block_until_ready(out2)
    ref2 = (W2 * x2).sum(-1) + bias2
    assert out2.shape == (B2, C2)
    assert bool(jnp.allclose(out2, ref2, atol=1e-4, rtol=1e-4)), "GroupWiseLinear mismatch (2)"

    print("KERNEL_OK")
</pallas_src>

<mosaic_0001>
module attributes {stable_mosaic.version = 11 : i64} {
  func.func @_gwl_kernel(%arg0: i32, %arg1: i32, %arg2: memref<2x128x128xf32, #tpu.memory_space<vmem>>, %arg3: memref<128x128xf32, #tpu.memory_space<vmem>>, %arg4: memref<1x128xf32, #tpu.memory_space<vmem>>, %arg5: memref<2x128xf32, #tpu.memory_space<vmem>>) attributes {dimension_semantics = [#tpu.dimension_semantics<parallel>, #tpu.dimension_semantics<parallel>], iteration_bounds = array<i64: 1, 1>, scalar_prefetch = 0 : i64, scratch_operands = 0 : i64, tpu.core_type = #tpu.core_type<tc>, window_params = [{transform_indices = @transform_0, window_bounds = array<i64: 2, 128, 128>}, {transform_indices = @transform_1, window_bounds = array<i64: 128, 128>}, {transform_indices = @transform_2, window_bounds = array<i64: 1, 128>}, {transform_indices = @transform_3, window_bounds = array<i64: 2, 128>}]} {
    %c0 = arith.constant 0 : index
    %c0_0 = arith.constant 0 : index
    %c0_1 = arith.constant 0 : index
    %0 = vector.load %arg2[%c0, %c0_0, %c0_1] : memref<2x128x128xf32, #tpu.memory_space<vmem>>, vector<2x128x128xf32>
    %c0_2 = arith.constant 0 : index
    %c0_3 = arith.constant 0 : index
    %1 = vector.load %arg3[%c0_2, %c0_3] : memref<128x128xf32, #tpu.memory_space<vmem>>, vector<128x128xf32>
    %2 = vector.shape_cast %1 : vector<128x128xf32> to vector<1x128x128xf32>
    %3 = vector.broadcast %2 : vector<1x128x128xf32> to vector<2x128x128xf32>
    %4 = arith.mulf %0, %3 : vector<2x128x128xf32>
    %cst = arith.constant dense<0.000000e+00> : vector<2x128xf32>
    %5 = vector.multi_reduction <add>, %4, %cst [2] : vector<2x128x128xf32> to vector<2x128xf32>
    %c0_4 = arith.constant 0 : index
    %c0_5 = arith.constant 0 : index
    %6 = vector.load %arg4[%c0_4, %c0_5] : memref<1x128xf32, #tpu.memory_space<vmem>>, vector<1x128xf32>
    %7 = vector.broadcast %6 : vector<1x128xf32> to vector<2x128xf32>
    %8 = arith.addf %5, %7 : vector<2x128xf32>
    %c0_6 = arith.constant 0 : index
    %c0_7 = arith.constant 0 : index
    %9 = vector.load %arg5[%c0_6, %c0_7] : memref<2x128xf32, #tpu.memory_space<vmem>>, vector<2x128xf32>
    tpu.vector_store %arg5[%c0_6, %c0_7], %8 {strides = array<i32>} : memref<2x128xf32, #tpu.memory_space<vmem>>, vector<2x128xf32>,
    return
  }
  func.func @transform_0(%arg0: i32, %arg1: i32) -> (i32, i32, i32) {
    %c0_i32 = arith.constant 0 : i32
    %c0_i32_0 = arith.constant 0 : i32
    return %arg0, %arg1, %c0_i32 : i32, i32, i32
  }
  func.func @transform_1(%arg0: i32, %arg1: i32) -> (i32, i32) {
    %c0_i32 = arith.constant 0 : i32
    %c0_i32_0 = arith.constant 0 : i32
    return %arg1, %c0_i32 : i32, i32
  }
  func.func @transform_2(%arg0: i32, %arg1: i32) -> (i32, i32) {
    %c0_i32 = arith.constant 0 : i32
    %c0_i32_0 = arith.constant 0 : i32
    return %c0_i32, %arg1 : i32, i32
  }
  func.func @transform_3(%arg0: i32, %arg1: i32) -> (i32, i32) {
    %c0_i32 = arith.constant 0 : i32
    return %arg0, %arg1 : i32, i32
  }
}

</mosaic_0001>

<bundles_post_ra>
// kernel: group_wise_linear.1
= control target key start
LH: loop header
LB: loop body
LE: loop exit
PB: predicated region body
PF: predicated region fallthrough
CT: control target
= control target key end

     0   :  { %s976_s0 = inlined_call_operand.vmem [shape: f32[2,128,128], index: 0, kind: input, shape index: {}]   ;;  %s977_s1 = inlined_call_operand.vmem [shape: f32[128,128], index: 1, kind: input, shape index: {}]   ;;  %s978_s2 = inlined_call_operand.vmem [shape: f32[1,128], index: 2, kind: input, shape index: {}]   ;;  %s979_s3 = inlined_call_operand.hbm [shape: f32[2,128], index: 3, kind: output, shape index: {}]  }
   0x1   :  { %v17_v0 = vld [vmem:[%s976_s0 + $0x10] sm:$0xff]  ;;  %v15_v2 = vld [vmem:[%s976_s0] sm:$0xff]  ;;  %v18_v5 = vld [vmem:[%s976_s0 + $0x18] sm:$0xff] }
   0x2   :  { %v669_v1 = vld [vmem:[%s977_s1 + $0x10] sm:$0xff]  ;;  %v678_v4 = vld [vmem:[%s977_s1] sm:$0xff]  ;;  %v686_v6 = vld [vmem:[%s977_s1 + $0x18] sm:$0xff] }
   0x3   :  { %v65_v3 = vmul.f32 %v669_v1, %v17_v0  ;;  %v63_v7 = vmul.f32 %v678_v4, %v15_v2  ;;  %v16_v8 = vld [vmem:[%s976_s0 + $0x8] sm:$0xff]  ;;  %v66_v10 = vmul.f32 %v686_v6, %v18_v5  ;;  %v19_v14 = vld [vmem:[%s976_s0 + $0x20] sm:$0xff]  ;;  %v22_v18 = vld [vmem:[%s976_s0 + $0x38] sm:$0xff] }
   0x4   :  { %v48_v9 = vld [vmem:[%s977_s1 + $0x8] sm:$0xff]  ;;  %v710_v15 = vld [vmem:[%s977_s1 + $0x20] sm:$0xff]  ;;  %v54_v19 = vld [vmem:[%s977_s1 + $0x38] sm:$0xff] }
   0x5   :  { %99 = vadd.xlane.f32.xlu1 %v65_v3  ;;  %95 = vadd.xlane.f32.xlu0 %v63_v7  ;;  %v64_v11 = vmul.f32 %v48_v9, %v16_v8  ;;  %v20_v12 = vld [vmem:[%s976_s0 + $0x28] sm:$0xff]  ;;  %v67_v17 = vmul.f32 %v710_v15, %v19_v14  ;;  %v21_v20 = vld [vmem:[%s976_s0 + $0x30] sm:$0xff]  ;;  %v70_v22 = vmul.f32 %v54_v19, %v22_v18  ;;  %v23_v26 = vld [vmem:[%s976_s0 + $0x40] sm:$0xff] }
   0x6   :  { %v702_v13 = vld [vmem:[%s977_s1 + $0x28] sm:$0xff]  ;;  %v53_v21 = vld [vmem:[%s977_s1 + $0x30] sm:$0xff]  ;;  %v55_v27 = vld [vmem:[%s977_s1 + $0x40] sm:$0xff] }
   0x7   :  { %v68_v16 = vmul.f32 %v702_v13, %v20_v12  ;;  %v69_v23 = vmul.f32 %v53_v21, %v21_v20  ;;  %v24_v24 = vld [vmem:[%s976_s0 + $0x48] sm:$0xff]  ;;  %v71_v29 = vmul.f32 %v55_v27, %v23_v26  ;;  %v26_v30 = vld [vmem:[%s976_s0 + $0x58] sm:$0xff] }
   0x8   :  { %v56_v25 = vld [vmem:[%s977_s1 + $0x48] sm:$0xff]  ;;  %v58_v31 = vld [vmem:[%s977_s1 + $0x58] sm:$0xff] }
   0x9   :  { %101 = vadd.xlane.f32.xlu1 %v66_v10  ;;  %97 = vadd.xlane.f32.xlu0 %v64_v11  ;;  %v72_v28 = vmul.f32 %v56_v25, %v24_v24 }
   0xd   :  { %105 = vadd.xlane.f32.xlu1 %v68_v16  ;;  %103 = vadd.xlane.f32.xlu0 %v67_v17 }
  0x11   :  { %109 = vadd.xlane.f32.xlu1 %v70_v22  ;;  %107 = vadd.xlane.f32.xlu0 %v69_v23 }
  0x12   :  { %8 = vsyncpa [#allocation3], 0  ;;  %v25_v32 = vld [vmem:[%s976_s0 + $0x50] sm:$0xff]  ;;  %v74_v34 = vmul.f32 %v58_v31, %v26_v30  ;;  %v28_v36 = vld [vmem:[%s976_s0 + $0x68] sm:$0xff]  ;;  %v641_v17 = vmov 0   ;;  %vm415_vm0 = vcmask 130112  }
  0x13   :  { %v57_v33 = vld [vmem:[%s977_s1 + $0x50] sm:$0xff]  ;;  %v60_v37 = vld [vmem:[%s977_s1 + $0x68] sm:$0xff]  ;;  %v27_v38 = vld [vmem:[%s976_s0 + $0x60] sm:$0xff]  ;;  %616 = vset.pattern.permute.xlu1 %v641_v17  ;;  %615 = vset.pattern.permute.xlu0 %v641_v17  ;;  %vm422_vm1 = vcmask 195712   ;;  %vm429_vm2 = vcmask 261312   ;;  %vm436_vm3 = vcmask 326912  }
  0x14   :  { %v73_v35 = vmul.f32 %v57_v33, %v25_v32  ;;  %v59_v39 = vld [vmem:[%s977_s1 + $0x60] sm:$0xff]  ;;  %v76_v40 = vmul.f32 %v60_v37, %v28_v36  ;;  %v30_v42 = vld [vmem:[%s976_s0 + $0x78] sm:$0xff]  ;;  %v29_v44 = vld [vmem:[%s976_s0 + $0x70] sm:$0xff]  ;;  %vm443_vm4 = vcmask 392512   ;;  %vm450_vm5 = vcmask 458112  }
  0x15   :  { %113 = vadd.xlane.f32.xlu1 %v72_v28  ;;  %111 = vadd.xlane.f32.xlu0 %v71_v29  ;;  %v75_v41 = vmul.f32 %v59_v39, %v27_v38  ;;  %v62_v43 = vld [vmem:[%s977_s1 + $0x78] sm:$0xff]  ;;  %v61_v45 = vld [vmem:[%s977_s1 + $0x70] sm:$0xff]  ;;  %v32_v48 = vld [vmem:[%s976_s0 + $0x88] sm:$0xff]  ;;  %vm457_vm6 = vcmask 523712   ;;  %vm464_vm7 = vcmask 589312   ;;  %vm471_vm8 = vcmask 654912  }
  0x16   :  { %v78_v46 = vmul.f32 %v62_v43, %v30_v42  ;;  %v77_v47 = vmul.f32 %v61_v45, %v29_v44  ;;  %v31_v49 = vld [vmem:[%s976_s0 + $0x80] sm:$0xff]  ;;  %v80_v50 = vmul.f32 %v48_v9, %v32_v48  ;;  %v34_v52 = vld [vmem:[%s976_s0 + $0x98] sm:$0xff]  ;;  %v33_v53 = vld [vmem:[%s976_s0 + $0x90] sm:$0xff]  ;;  %vm478_vm9 = vcmask 720512  }
  0x17   :  { %v79_v51 = vmul.f32 %v678_v4, %v31_v49  ;;  %v82_v54 = vmul.f32 %v686_v6, %v34_v52  ;;  %v81_v55 = vmul.f32 %v669_v1, %v33_v53  ;;  %v36_v56 = vld [vmem:[%s976_s0 + $0xa8] sm:$0xff]  ;;  %v35_v57 = vld [vmem:[%s976_s0 + $0xa0] sm:$0xff]  ;;  %v38_v60 = vld [vmem:[%s976_s0 + $0xb8] sm:$0xff]  ;;  %vm485_vm10 = vcmask 786112  }
  0x18   :  { %v84_v58 = vmul.f32 %v702_v13, %v36_v56  ;;  %v83_v59 = vmul.f32 %v710_v15, %v35_v57  ;;  %v37_v61 = vld [vmem:[%s976_s0 + $0xb0] sm:$0xff]  ;;  %v86_v62 = vmul.f32 %v54_v19, %v38_v60  ;;  %v40_v0 = vld [vmem:[%s976_s0 + $0xc8] sm:$0xff]  ;;  %v39_v1 = vld [vmem:[%s976_s0 + $0xc0] sm:$0xff]  ;;  %vm492_vm11 = vcmask 851712  }
  0x19   :  { %117 = vadd.xlane.f32.xlu1 %v74_v34  ;;  %115 = vadd.xlane.f32.xlu0 %v73_v35  ;;  %v85_v63 = vmul.f32 %v53_v21, %v37_v61  ;;  %v88_v2 = vmul.f32 %v56_v25, %v40_v0  ;;  %v87_v3 = vmul.f32 %v55_v27, %v39_v1  ;;  %v42_v4 = vld [vmem:[%s976_s0 + $0xd8] sm:$0xff]  ;;  %v41_v5 = vld [vmem:[%s976_s0 + $0xd0] sm:$0xff]  ;;  %v44_v8 = vld [vmem:[%s976_s0 + $0xe8] sm:$0xff]  ;;  %vm499_vm12 = vcmask 917312  }
  0x1a   :  { %v90_v6 = vmul.f32 %v58_v31, %v42_v4  ;;  %v89_v7 = vmul.f32 %v57_v33, %v41_v5  ;;  %v43_v9 = vld [vmem:[%s976_s0 + $0xe0] sm:$0xff]  ;;  %v92_v10 = vmul.f32 %v60_v37, %v44_v8  ;;  %v46_v12 = vld [vmem:[%s976_s0 + $0xf8] sm:$0xff]  ;;  %v45_v13 = vld [vmem:[%s976_s0 + $0xf0] sm:$0xff]  ;;  %vm506_vm13 = vcmask 982912   ;;  %s642_s0 = smov [#allocation2]  }
  0x1b   :  { %v91_v11 = vmul.f32 %v59_v39, %v43_v9  ;;  %v94_v14 = vmul.f32 %v62_v43, %v46_v12  ;;  %v93_v15 = vmul.f32 %v61_v45, %v45_v13  ;;  %v612_v16 = vld [vmem:[%s978_s2] ss:$0 sm:$0xff]  ;;  %vm513_vm14 = vcmask 1048512   ;;  %s604_s2 = sshll.u32 %s642_s0, 4  ;;  %s605_s2 = int_to_ptr.vmem [resolvable:$true] %s604_s2 }
  0x1c   :  { %vm594_vm15 = vcmask 1041409   ;;  %s617_s1 = scalar_lea.vmem %s605_s2, 32  ;;  %p622_p1 = scmp.lt.s32.totalorder %s605_s2, %s605_s2 }
  0x1d   :  { %121 = vadd.xlane.f32.xlu1 %v76_v40  ;;  %119 = vadd.xlane.f32.xlu0 %v75_v41  ;;  %p618_p0 = scmp.ne.s32.totalorder %s605_s2, %s617_s1  ;;  %p623_p2 = scmp.lt.s32.totalorder %s617_s1, %s617_s1 }
  0x1f   :  { %p624_p3 = por %p623_p2, %p622_p1 }
  0x21   :  { %125 = vadd.xlane.f32.xlu1 %v78_v46  ;;  %123 = vadd.xlane.f32.xlu0 %v77_v47  ;;  %p625_p4 = pnand %p624_p3, %p618_p0 }
  0x25   :  { %129 = vadd.xlane.f32.xlu1 %v80_v50  ;;  %127 = vadd.xlane.f32.xlu0 %v79_v51 }
  0x29   :  { %133 = vadd.xlane.f32.xlu1 %v82_v54  ;;  %131 = vadd.xlane.f32.xlu0 %v81_v55 }
  0x2d   :  { %137 = vadd.xlane.f32.xlu1 %v84_v58  ;;  %135 = vadd.xlane.f32.xlu0 %v83_v59 }
  0x31   :  { %141 = vadd.xlane.f32.xlu1 %v86_v62  ;;  %139 = vadd.xlane.f32.xlu0 %v85_v63 }
  0x35   :  { %145 = vadd.xlane.f32.xlu1 %v88_v2  ;;  %143 = vadd.xlane.f32.xlu0 %v87_v3 }
  0x39   :  { %149 = vadd.xlane.f32.xlu1 %v90_v6  ;;  %147 = vadd.xlane.f32.xlu0 %v89_v7 }
  0x3d   :  { %153 = vadd.xlane.f32.xlu1 %v92_v10  ;;  %151 = vadd.xlane.f32.xlu0 %v91_v11 }
  0x41   :  { %157 = vadd.xlane.f32.xlu1 %v94_v14  ;;  %155 = vadd.xlane.f32.xlu0 %v93_v15 }
  0x52   :  { %170 = vbcast.lane.b32.xlu1 %v612_v16, 264 }
  0x56   :  { %174 = vbcast.lane.b32.xlu1 %v612_v16, 272 }
  0x57   :  { %166 = vbcast.lane.b32.xlu0 %v612_v16, 256 }
  0x5a   :  { %178 = vbcast.lane.b32.xlu1 %v612_v16, 280 }
  0x5b   :  { %182 = vbcast.lane.b32.xlu0 %v612_v16, 288 }
  0x5e   :  { %186 = vbcast.lane.b32.xlu1 %v612_v16, 296 }
  0x5f   :  { %190 = vbcast.lane.b32.xlu0 %v612_v16, 304 }
  0x62   :  { %194 = vbcast.lane.b32.xlu1 %v612_v16, 312 }
  0x63   :  { %198 = vbcast.lane.b32.xlu0 %v612_v16, 320 }
  0x66   :  { %202 = vbcast.lane.b32.xlu1 %v612_v16, 328 }
  0x67   :  { %206 = vbcast.lane.b32.xlu0 %v612_v16, 336 }
  0x6a   :  { %210 = vbcast.lane.b32.xlu1 %v612_v16, 344 }
  0x6b   :  { %214 = vbcast.lane.b32.xlu0 %v612_v16, 352 }
  0x6e   :  { %218 = vbcast.lane.b32.xlu1 %v612_v16, 360 }
  0x6f   :  { %222 = vbcast.lane.b32.xlu0 %v612_v16, 368 }
  0x72   :  { %226 = vbcast.lane.b32.xlu1 %v612_v16, 376 }
  0x92   :  { %v100_v18 = vpop.xlane.xlu1 %99  ;;  %v96_v19 = vpop.xlane.xlu0 %95 }
  0x96   :  { %v102_v20 = vpop.xlane.xlu1 %101  ;;  %v98_v21 = vpop.xlane.xlu0 %97 }
  0x9a   :  { %v106_v22 = vpop.xlane.xlu1 %105  ;;  %v104_v23 = vpop.xlane.xlu0 %103 }
  0x9e   :  { %v110_v24 = vpop.xlane.xlu1 %109  ;;  %v108_v25 = vpop.xlane.xlu0 %107 }
  0xa2   :  { %v114_v26 = vpop.xlane.xlu1 %113  ;;  %v112_v27 = vpop.xlane.xlu0 %111 }
  0xa6   :  { %v830_v28 = vpop.xlane.xlu1 %117  ;;  %v116_v29 = vpop.xlane.xlu0 %115 }
  0xaa   :  { %v832_v30 = vpop.xlane.xlu1 %121  ;;  %v834_v31 = vpop.xlane.xlu0 %119 }
  0xae   :  { %v836_v32 = vpop.xlane.xlu1 %125  ;;  %v838_v33 = vpop.xlane.xlu0 %123 }
  0xb2   :  { %v130_v34 = vpop.xlane.xlu1 %129  ;;  %v128_v35 = vpop.xlane.xlu0 %127 }
  0xb6   :  { %v134_v36 = vpop.xlane.xlu1 %133  ;;  %v132_v37 = vpop.xlane.xlu0 %131 }
  0xba   :  { %v138_v38 = vpop.xlane.xlu1 %137  ;;  %v136_v39 = vpop.xlane.xlu0 %135 }
  0xbe   :  { %v142_v40 = vpop.xlane.xlu1 %141  ;;  %v140_v41 = vpop.xlane.xlu0 %139 }
  0xc2   :  { %v146_v42 = vpop.xlane.xlu1 %145  ;;  %v144_v43 = vpop.xlane.xlu0 %143 }
  0xc6   :  { %v840_v44 = vpop.xlane.xlu1 %149  ;;  %v148_v45 = vpop.xlane.xlu0 %147 }
  0xca   :  { %v842_v46 = vpop.xlane.xlu1 %153  ;;  %v844_v47 = vpop.xlane.xlu0 %151 }
  0xce   :  { %v846_v48 = vpop.xlane.xlu1 %157  ;;  %v848_v49 = vpop.xlane.xlu0 %155 }
  0xd2   :  { %v171_v50 = vpop.permute.xlu1 %170  ;;  %v167_v52 = vpop.permute.xlu0 %166 }
  0xd3   :  { %v245_v51 = vadd.f32 %v171_v50, %v98_v21  ;;  %v244_v53 = vadd.f32 %v167_v52, %v96_v19  ;;  %v261_v8 = vadd.f32 %v171_v50, %v130_v34  ;;  %v260_v9 = vadd.f32 %v167_v52, %v128_v35 }
  0xd5   :  { %312 = vperm.xlu1 %616, %v245_v51   ;;  %309 = vperm.xlu0 %615, %v244_v53  }
  0xd6   :  { %v175_v54 = vpop.permute.xlu1 %174  ;;  %v183_v56 = vpop.permute.xlu0 %182 }
  0xd7   :  { %v246_v55 = vadd.f32 %v175_v54, %v100_v18  ;;  %v248_v58 = vadd.f32 %v183_v56, %v104_v23  ;;  %v262_v10 = vadd.f32 %v175_v54, %v132_v37  ;;  %v264_v12 = vadd.f32 %v183_v56, %v136_v39 }
  0xd9   :  { %315 = vperm.xlu1 %616, %v246_v55  }
  0xda   :  { %v179_v57 = vpop.permute.xlu1 %178  ;;  %v191_v60 = vpop.permute.xlu0 %190 }
  0xdb   :  { %v247_v59 = vadd.f32 %v179_v57, %v102_v20  ;;  %v250_v62 = vadd.f32 %v191_v60, %v108_v25  ;;  %v263_v11 = vadd.f32 %v179_v57, %v134_v36  ;;  %v266_v14 = vadd.f32 %v191_v60, %v140_v41 }
  0xdd   :  { %318 = vperm.xlu0 %615, %v247_v59   ;;  %321 = vperm.xlu1 %616, %v248_v58  }
  0xde   :  { %v187_v61 = vpop.permute.xlu1 %186  ;;  %v199_v0 = vpop.permute.xlu0 %198 }
  0xdf   :  { %v249_v63 = vadd.f32 %v187_v61, %v106_v22  ;;  %v252_v2 = vadd.f32 %v199_v0, %v112_v27  ;;  %v265_v13 = vadd.f32 %v187_v61, %v138_v38  ;;  %v268_v16 = vadd.f32 %v199_v0, %v144_v43 }
  0xe1   :  { %324 = vperm.xlu0 %615, %v249_v63   ;;  %327 = vperm.xlu1 %616, %v250_v62  }
  0xe2   :  { %v195_v1 = vpop.permute.xlu1 %194  ;;  %v207_v4 = vpop.permute.xlu0 %206 }
  0xe3   :  { %v251_v3 = vadd.f32 %v195_v1, %v110_v24  ;;  %v254_v6 = vadd.f32 %v207_v4, %v116_v29  ;;  %v267_v15 = vadd.f32 %v195_v1, %v142_v40  ;;  %v270_v19 = vadd.f32 %v207_v4, %v148_v45 }
  0xe5   :  { %330 = vperm.xlu0 %615, %v251_v3   ;;  %333 = vperm.xlu1 %616, %v252_v2  }
  0xe6   :  { %v203_v5 = vpop.permute.xlu1 %202  ;;  %v215_v21 = vpop.permute.xlu0 %214 }
  0xe7   :  { %v253_v7 = vadd.f32 %v203_v5, %v114_v26  ;;  %v269_v17 = vadd.f32 %v203_v5, %v146_v42  ;;  %v256_v22 = vadd.f32 %v215_v21, %v834_v31  ;;  %v272_v25 = vadd.f32 %v215_v21, %v844_v47 }
  0xe8   :  { %v404_v47 = vlaneseq }
  0xe9   :  { %336 = vperm.xlu0 %615, %v253_v7   ;;  %339 = vperm.xlu1 %616, %v254_v6  }
  0xea   :  { %v211_v18 = vpop.permute.xlu1 %210  ;;  %v223_v27 = vpop.permute.xlu0 %222  ;;  %v874_v50 = vand.u32 127, %v404_v47  ;;  %v878_v53 = vshrl.u32 %v404_v47, 7 }
  0xeb   :  { %v255_v20 = vadd.f32 %v211_v18, %v830_v28  ;;  %v271_v23 = vadd.f32 %v211_v18, %v840_v44  ;;  %v258_v29 = vadd.f32 %v223_v27, %v838_v33  ;;  %v274_v31 = vadd.f32 %v223_v27, %v848_v49 }
  0xec   :  { %v410_v54 = vadd.s32 4294967288, %v874_v50  ;;  %v417_v55 = vadd.s32 4294967280, %v874_v50  ;;  %v424_v56 = vadd.s32 4294967272, %v874_v50  ;;  %v408_v60 = vsub.s32 %v874_v50, %v878_v53 }
  0xed   :  { %357 = vperm.xlu0 %615, %v260_v9   ;;  %360 = vperm.xlu1 %616, %v261_v8   ;;  %v431_v62 = vadd.s32 4294967264, %v874_v50  ;;  %v438_v0 = vadd.s32 4294967256, %v874_v50  ;;  %v445_v1 = vadd.s32 4294967248, %v874_v50  ;;  %v459_v18 = vadd.s32 4294967232, %v874_v50 }
  0xee   :  { %v219_v24 = vpop.permute.xlu1 %218  ;;  %v413_v59 = vsub.s32 %v410_v54, %v878_v53  ;;  %v420_v61 = vsub.s32 %v417_v55, %v878_v53  ;;  %v427_v63 = vsub.s32 %v424_v56, %v878_v53  ;;  %v480_v47 = vadd.s32 4294967208, %v874_v50 }
  0xef   :  { %v257_v26 = vadd.f32 %v219_v24, %v832_v30  ;;  %v273_v28 = vadd.f32 %v219_v24, %v842_v46  ;;  %v434_v9 = vsub.s32 %v431_v62, %v878_v53  ;;  %v494_v55 = vadd.s32 4294967192, %v874_v50 }
  0xf1   :  { %363 = vperm.xlu0 %615, %v262_v10   ;;  %366 = vperm.xlu1 %616, %v263_v11  }
  0xf2   :  { %v227_v34 = vpop.permute.xlu1 %226 }
  0xf3   :  { %v259_v35 = vadd.f32 %v227_v34, %v836_v32  ;;  %v275_v36 = vadd.f32 %v227_v34, %v846_v48 }
  0xf5   :  { %369 = vperm.xlu0 %615, %v264_v12   ;;  %372 = vperm.xlu1 %616, %v265_v13   ;;  %v441_v12 = vsub.s32 %v438_v0, %v878_v53  ;;  %v452_v13 = vadd.s32 4294967240, %v874_v50 }
  0xf7   :  { %v455_v27 = vsub.s32 %v452_v13, %v878_v53 }
  0xf9   :  { %375 = vperm.xlu0 %615, %v266_v14   ;;  %378 = vperm.xlu1 %616, %v267_v15   ;;  %v448_v14 = vsub.s32 %v445_v1, %v878_v53 }
  0xfd   :  { %381 = vperm.xlu0 %615, %v268_v16   ;;  %384 = vperm.xlu1 %616, %v269_v17  }
 0x101   :  { %387 = vperm.xlu0 %615, %v270_v19   ;;  %342 = vperm.xlu1 %616, %v255_v20  }
 0x105   :  { %390 = vperm.xlu0 %615, %v271_v23   ;;  %345 = vperm.xlu1 %616, %v256_v22  }
 0x109   :  { %393 = vperm.xlu0 %615, %v272_v25   ;;  %348 = vperm.xlu1 %616, %v257_v26  }
 0x10d   :  { %396 = vperm.xlu0 %615, %v273_v28   ;;  %351 = vperm.xlu1 %616, %v258_v29   ;;  %v466_v29 = vadd.s32 4294967224, %v874_v50  ;;  %v473_v28 = vadd.s32 4294967216, %v874_v50 }
 0x111   :  { %399 = vperm.xlu0 %615, %v274_v31   ;;  %354 = vperm.xlu1 %616, %v259_v35   ;;  %v462_v35 = vsub.s32 %v459_v18, %v878_v53 }
 0x115   :  { %402 = vperm.xlu0 %615, %v275_v36  }
 0x154   :  { %v313_v30 = vpop.permute.xlu1 %312  ;;  %v310_v37 = vpop.permute.xlu0 %309 }
 0x155   :  { %v414_v4 = vrot.slane %v313_v30, %v413_v59  ;;  %v409_v5 = vrot.slane %v310_v37, %v408_v60 }
 0x157   :  { %v416_v17 = vsel %vm415_vm0, %v414_v4, %v409_v5 }
 0x158   :  { %v316_v38 = vpop.permute.xlu1 %315 }
 0x159   :  { %v421_v8 = vrot.slane %v316_v38, %v420_v61 }
 0x15b   :  { %v423_v21 = vsel %vm422_vm1, %v421_v8, %v416_v17 }
 0x15c   :  { %v860_v39 = vpop.permute.xlu1 %321  ;;  %v319_v33 = vpop.permute.xlu0 %318 }
 0x15d   :  { %v428_v11 = vrot.slane %v319_v33, %v427_v63  ;;  %v435_v22 = vrot.slane %v860_v39, %v434_v9 }
 0x15f   :  { %v430_v25 = vsel %vm429_vm2, %v428_v11, %v423_v21 }
 0x160   :  { %v862_v40 = vpop.permute.xlu1 %327  ;;  %v864_v41 = vpop.permute.xlu0 %324  ;;  %v437_v38 = vsel %vm436_vm3, %v435_v22, %v430_v25 }
 0x161   :  { %v442_v26 = vrot.slane %v864_v41, %v441_v12  ;;  %v449_v37 = vrot.slane %v862_v40, %v448_v14  ;;  %v487_v40 = vadd.s32 4294967200, %v874_v50 }
 0x163   :  { %v444_v41 = vsel %vm443_vm4, %v442_v26, %v437_v38  ;;  %v490_v0 = vsub.s32 %v487_v40, %v878_v53 }
 0x164   :  { %v866_v42 = vpop.permute.xlu1 %333  ;;  %v868_v43 = vpop.permute.xlu0 %330 }
 0x165   :  { %v463_v56 = vrot.slane %v866_v42, %v462_v35 }
 0x168   :  { %v870_v32 = vpop.permute.xlu1 %339  ;;  %v872_v44 = vpop.permute.xlu0 %336 }
 0x16c   :  { %v361_v45 = vpop.permute.xlu1 %360  ;;  %v358_v46 = vpop.permute.xlu0 %357 }
 0x16d   :  { %v522_v6 = vrot.slane %v361_v45, %v413_v59  ;;  %v518_v7 = vrot.slane %v358_v46, %v408_v60  ;;  %v456_v45 = vrot.slane %v868_v43, %v455_v27  ;;  %v469_v46 = vsub.s32 %v466_v29, %v878_v53 }
 0x16e   :  { %v501_v43 = vadd.s32 4294967184, %v874_v50 }
 0x16f   :  { %v523_v19 = vsel %vm415_vm0, %v522_v6, %v518_v7  ;;  %v470_v62 = vrot.slane %v872_v44, %v469_v46 }
 0x170   :  { %v367_v48 = vpop.permute.xlu1 %366  ;;  %v364_v49 = vpop.permute.xlu0 %363  ;;  %v504_v6 = vsub.s32 %v501_v43, %v878_v53 }
 0x171   :  { %v527_v10 = vrot.slane %v364_v49, %v420_v61  ;;  %v532_v20 = vrot.slane %v367_v48, %v427_v63  ;;  %v476_v48 = vsub.s32 %v473_v28, %v878_v53  ;;  %v508_v63 = vadd.s32 4294967176, %v874_v50 }
 0x173   :  { %v528_v23 = vsel %vm422_vm1, %v527_v10, %v523_v19  ;;  %v477_v44 = vrot.slane %v870_v32, %v476_v48  ;;  %v511_v11 = vsub.s32 %v508_v63, %v878_v53 }
 0x174   :  { %v876_v51 = vpop.permute.xlu1 %372  ;;  %v370_v52 = vpop.permute.xlu0 %369  ;;  %v533_v30 = vsel %vm429_vm2, %v532_v20, %v528_v23 }
 0x175   :  { %v537_v24 = vrot.slane %v370_v52, %v434_v9  ;;  %v542_v36 = vrot.slane %v876_v51, %v441_v12 }
 0x177   :  { %v538_v39 = vsel %vm436_vm3, %v537_v24, %v533_v30 }
 0x178   :  { %v883_v57 = vpop.permute.xlu1 %378  ;;  %v885_v58 = vpop.permute.xlu0 %375  ;;  %v543_v54 = vsel %vm443_vm4, %v542_v36, %v538_v39 }
 0x179   :  { %v547_v33 = vrot.slane %v885_v58, %v448_v14  ;;  %v552_v52 = vrot.slane %v883_v57, %v455_v27  ;;  %v451_v58 = vsel %vm450_vm5, %v449_v37, %v444_v41  ;;  %v483_v57 = vsub.s32 %v480_v47, %v878_v53 }
 0x17a   :  { %v458_v61 = vsel %vm457_vm6, %v456_v45, %v451_v58 }
 0x17b   :  { %v548_v59 = vsel %vm450_vm5, %v547_v33, %v543_v54  ;;  %v465_v7 = vsel %vm464_vm7, %v463_v56, %v458_v61 }
 0x17c   :  { %v895_v2 = vpop.permute.xlu1 %384  ;;  %v897_v3 = vpop.permute.xlu0 %381  ;;  %v553_v5 = vsel %vm457_vm6, %v552_v52, %v548_v59  ;;  %v472_v9 = vsel %vm471_vm8, %v470_v62, %v465_v7 }
 0x17d   :  { %v557_v60 = vrot.slane %v897_v3, %v462_v35  ;;  %v562_v4 = vrot.slane %v895_v2, %v469_v46  ;;  %v497_v3 = vsub.s32 %v494_v55, %v878_v53  ;;  %v479_v19 = vsel %vm478_vm9, %v477_v44, %v472_v9 }
 0x17f   :  { %v558_v50 = vsel %vm464_vm7, %v557_v60, %v553_v5 }
 0x180   :  { %v903_v15 = vpop.permute.xlu1 %342  ;;  %v905_v16 = vpop.permute.xlu0 %387  ;;  %v563_v17 = vsel %vm471_vm8, %v562_v4, %v558_v50 }
 0x181   :  { %v567_v8 = vrot.slane %v905_v16, %v476_v48  ;;  %v484_v10 = vrot.slane %v903_v15, %v483_v57 }
 0x183   :  { %v568_v15 = vsel %vm478_vm9, %v567_v8, %v563_v17  ;;  %v486_v22 = vsel %vm485_vm10, %v484_v10, %v479_v19 }
 0x184   :  { %v914_v34 = vpop.permute.xlu1 %345  ;;  %v916_v31 = vpop.permute.xlu0 %390 }
 0x185   :  { %v572_v2 = vrot.slane %v916_v31, %v483_v57  ;;  %v491_v12 = vrot.slane %v914_v34, %v490_v0 }
 0x187   :  { %v573_v53 = vsel %vm485_vm10, %v572_v2, %v568_v15  ;;  %v493_v24 = vsel %vm492_vm11, %v491_v12, %v486_v22 }
 0x188   :  { %v349_v49 = vpop.permute.xlu1 %348  ;;  %v394_v51 = vpop.permute.xlu0 %393 }
 0x189   :  { %v577_v13 = vrot.slane %v394_v51, %v490_v0  ;;  %v498_v18 = vrot.slane %v349_v49, %v497_v3 }
 0x18b   :  { %v578_v25 = vsel %vm492_vm11, %v577_v13, %v573_v53  ;;  %v500_v27 = vsel %vm499_vm12, %v498_v18, %v493_v24 }
 0x18c   :  { %v352_v1 = vpop.permute.xlu1 %351  ;;  %v397_v42 = vpop.permute.xlu0 %396 }
 0x18d   :  { %v582_v16 = vrot.slane %v397_v42, %v497_v3  ;;  %v505_v20 = vrot.slane %v352_v1, %v504_v6 }
 0x18f   :  { %v583_v29 = vsel %vm499_vm12, %v582_v16, %v578_v25  ;;  %v507_v34 = vsel %vm506_vm13, %v505_v20, %v500_v27 }
 0x190   :  { %v355_v32 = vpop.permute.xlu1 %354  ;;  %v400_v14 = vpop.permute.xlu0 %399 }
 0x191   :  { %v587_v21 = vrot.slane %v400_v14, %v504_v6  ;;  %v512_v23 = vrot.slane %v355_v32, %v511_v11 }
 0x193   :  { %v588_v31 = vsel %vm506_vm13, %v587_v21, %v583_v29  ;;  %v514_v35 = vsel %vm513_vm14, %v512_v23, %v507_v34 }
 0x194   :  { %v403_v26 = vpop.permute.xlu0 %402 }
 0x195   :  { %v592_v28 = vrot.slane %v403_v26, %v511_v11 }
 0x197   :  { %v593_v36 = vsel %vm513_vm14, %v592_v28, %v588_v31 }
 0x198   :  { %v595_v30 = vsel %vm594_vm15, %v593_v36, %v514_v35 }
 0x199   :  { %597 = vst [vmem:[#allocation2] sm:$0x3] %v595_v30 }
 0x19a   :  { %628 = shalt.err (!%p625_p4)
}
 0x19b   :  { %s629_s30 = scalar_lea.hbm %s979_s3, 32 }
 0x19c   :  { %p630_p5 = scmp.ne.s32.totalorder %s979_s3, %s629_s30  ;;  %p633_p6 = scmp.lt.u32.totalorder %s629_s30, %s979_s3 }
 0x19e   :  { %p635_p7 = pnand %p633_p6, %p630_p5 }
 0x1a0   :  { %638 = shalt.err (!%p635_p7)
}
 0x1a1   :  { %607 = dma.vmem_to_hbm [thread:$0]  %s605_s2, 32, %s979_s3, [#allocation3]  }
 0x1a2   :  { %639 = dma.done.wait [#allocation3], 32  }
 0x1a3   :  { %640 = vsyncadd [#allocation3], 4294967264 }
 0x1a4   :  { %611 = vsyncpa [#allocation3], 1 }

</bundles_post_ra>
